<compile_context>
chip_gen: v5e
topology: v5e:2x2
jax: 0.10.0
libtpu: 0.0.40
codegen_flags: <defaults>
</compile_context>

<pallas_src>
import functools

import jax
import jax.numpy as jnp
from jax.experimental import pallas as pl
from jax.experimental.pallas import tpu as pltpu


def _cbam_kernel(x_ref, w1t_ref, w2t_ref, o_ref, *, spatial_axis):
    # x_ref:   (bb, C, HW) if spatial_axis == 2, else (bb, HW, C)
    # w1t_ref: (C, hidden)   == fc1.weight[:, :, 0, 0].T
    # w2t_ref: (hidden, C)   == fc2.weight[:, :, 0, 0].T
    x = x_ref[...]                                   # native dtype, whole block
    bb = x.shape[0]
    hw = x.shape[spatial_axis]

    # Global avg / max pooling over the spatial axis -> (bb, C) each.
    s = jnp.sum(x, axis=spatial_axis)
    m = jnp.max(x, axis=spatial_axis)

    # Merge avg & max branches of every batch into ONE (2*bb, C) matrix so the
    # shared MLP is two matmuls per grid step (not 4 per batch).
    pooled = jnp.concatenate([s * (1.0 / hw), m], axis=0).astype(jnp.float32)

    h = jnp.maximum(
        jnp.dot(pooled, w1t_ref[...], preferred_element_type=jnp.float32), 0.0
    )                                                # (2*bb, hidden)
    o = jnp.dot(h, w2t_ref[...], preferred_element_type=jnp.float32)  # (2*bb, C)

    att = jax.nn.sigmoid(o[:bb] + o[bb:])            # (bb, C), f32
    att = jnp.expand_dims(att, axis=spatial_axis).astype(x.dtype)

    # Broadcast multiply in the native dtype (no full-slab upcast).
    o_ref[...] = (x * att).astype(o_ref.dtype)


def _pick_block_batches(batch, per_batch_bytes, vmem_budget=24 * 1024 * 1024):
    """Largest divisor of `batch` whose double-buffered in+out block fits VMEM."""
    best = 1
    for bb in range(1, batch + 1):
        if batch % bb:
            continue
        # input block + output block, each double-buffered by the pipeline.
        if 4 * bb * per_batch_bytes <= vmem_budget:
            best = bb
    return best


def cbam_forward(x, w1, w2):
    """x: (B, C, H, W); w1: (hidden, C) = fc1 1x1-conv weight; w2: (C, hidden)."""
    B, C, H, W = x.shape
    HW = H * W
    hidden = w1.shape[0]
    itemsize = jnp.dtype(x.dtype).itemsize

    # Put whichever of (HW, C) is a multiple of 128 on the lane axis.
    channels_last = (HW % 128 != 0) and (C % 128 == 0)
    if channels_last:
        x2 = jnp.transpose(x.reshape(B, C, HW), (0, 2, 1))   # (B, HW, C)
        spatial_axis = 1
    else:
        x2 = x.reshape(B, C, HW)                             # (B, C, HW)
        spatial_axis = 2

    w1t = w1.T   # (C, hidden)
    w2t = w2.T   # (hidden, C)

    per_batch_bytes = C * HW * itemsize
    bb = _pick_block_batches(B, per_batch_bytes)
    grid = (B // bb,)
    blk = (bb,) + tuple(x2.shape[1:])

    # VMEM budget: only raise the scoped limit if a single block needs it.
    need = 4 * bb * per_batch_bytes + 4 * (w1t.size + w2t.size) * 4 + (1 << 20)
    vmem_limit = None
    if need > 32 * 1024 * 1024:
        # TODO(synk): add a spatial-tile grid axis (two-phase pool + multiply)
        # once a single (C, HW) slab no longer fits the scoped-VMEM budget.
        vmem_limit = int(min(need, 100 * 1024 * 1024))

    cost = pl.CostEstimate(
        flops=int(3 * B * C * HW + 8 * B * C * hidden),
        transcendentals=int(B * C),
        bytes_accessed=int(2 * B * C * HW * itemsize + (w1.size + w2.size) * 8),
    )

    kernel = functools.partial(_cbam_kernel, spatial_axis=spatial_axis)

    out = pl.pallas_call(
        kernel,
        out_shape=jax.ShapeDtypeStruct(x2.shape, x.dtype),
        grid_spec=pltpu.PrefetchScalarGridSpec(
            num_scalar_prefetch=0,
            grid=grid,
            in_specs=[
                pl.BlockSpec(blk, lambda g: (g, 0, 0)),
                pl.BlockSpec(w1t.shape, lambda g: (0, 0)),
                pl.BlockSpec(w2t.shape, lambda g: (0, 0)),
            ],
            out_specs=pl.BlockSpec(blk, lambda g: (g, 0, 0)),
        ),
        compiler_params=pltpu.CompilerParams(
            dimension_semantics=("parallel",),
            vmem_limit_bytes=vmem_limit,
        ),
        cost_estimate=cost,
    )(x2, w1t, w2t)

    if channels_last:
        out = jnp.transpose(out, (0, 2, 1))
    return out.reshape(B, C, H, W)


def cbam_reference(x, w1, w2):
    """Pure-JAX reference with identical semantics to the PyTorch module."""
    avg = jnp.mean(x, axis=(2, 3), keepdims=True)          # (B, C, 1, 1)
    mx = jnp.max(x, axis=(2, 3), keepdims=True)            # (B, C, 1, 1)

    def mlp(v):
        h = jnp.einsum("hc,bcxy->bhxy", w1, v)
        h = jnp.maximum(h, 0.0)
        return jnp.einsum("ch,bhxy->bcxy", w2, h)

    att = jax.nn.sigmoid(mlp(avg) + mlp(mx))
    return x * att


if __name__ == "__main__":
    # Module config: in_planes=4, ratio=16 -> ratio clamped to 4 -> hidden = 1
    B, C, H, W = 2, 4, 16, 16
    ratio = 16
    ratio = C if C <= ratio else ratio
    hidden = C // ratio

    key = jax.random.PRNGKey(0)
    kx, k1, k2 = jax.random.split(key, 3)
    x = jax.random.normal(kx, (B, C, H, W), dtype=jnp.float32)
    # Conv2d 1x1, no bias -> plain matrices.
    w1 = jax.random.normal(k1, (hidden, C), dtype=jnp.float32) * 0.5   # fc1.weight[:, :, 0, 0]
    w2 = jax.random.normal(k2, (C, hidden), dtype=jnp.float32) * 0.5   # fc2.weight[:, :, 0, 0]

    y = cbam_forward(x, w1, w2)
    y = jax.block_until_ready(y)

    y_ref = cbam_reference(x, w1, w2)
    assert y.shape == (B, C, H, W)
    assert jnp.allclose(y, y_ref, atol=1e-5, rtol=1e-5), "mismatch vs reference"

    print("KERNEL_OK")
</pallas_src>

<mosaic_0001>
module attributes {stable_mosaic.version = 11 : i64} {
  func.func @_cbam_kernel(%arg0: i32, %arg1: memref<2x4x256xf32, #tpu.memory_space<vmem>>, %arg2: memref<4x1xf32, #tpu.memory_space<vmem>>, %arg3: memref<1x4xf32, #tpu.memory_space<vmem>>, %arg4: memref<2x4x256xf32, #tpu.memory_space<vmem>>) attributes {dimension_semantics = [#tpu.dimension_semantics<parallel>], iteration_bounds = array<i64: 1>, scalar_prefetch = 0 : i64, scratch_operands = 0 : i64, tpu.core_type = #tpu.core_type<tc>, window_params = [{transform_indices = @transform_0, window_bounds = array<i64: 2, 4, 256>}, {pipeline_mode = #tpu.pipeline_mode<synchronous>, transform_indices = @transform_1, window_bounds = array<i64: 4, 1>}, {pipeline_mode = #tpu.pipeline_mode<synchronous>, transform_indices = @transform_2, window_bounds = array<i64: 1, 4>}, {transform_indices = @transform_3, window_bounds = array<i64: 2, 4, 256>}]} {
    %c0 = arith.constant 0 : index
    %c0_0 = arith.constant 0 : index
    %c0_1 = arith.constant 0 : index
    %0 = vector.load %arg1[%c0, %c0_0, %c0_1] : memref<2x4x256xf32, #tpu.memory_space<vmem>>, vector<2x4x256xf32>
    %cst = arith.constant dense<0.000000e+00> : vector<2x4xf32>
    %1 = vector.multi_reduction <add>, %0, %cst [2] : vector<2x4x256xf32> to vector<2x4xf32>
    %cst_2 = arith.constant dense<0xFF800000> : vector<2x4xf32>
    %2 = vector.multi_reduction <maximumf>, %0, %cst_2 [2] : vector<2x4x256xf32> to vector<2x4xf32>
    %cst_3 = arith.constant 3.906250e-03 : f32
    %3 = vector.broadcast %cst_3 : f32 to vector<2x4xf32>
    %4 = arith.mulf %1, %3 : vector<2x4xf32>
    %5 = tpu.concatenate %4, %2 in 0 : vector<2x4xf32>, vector<2x4xf32> -> vector<4x4xf32>
    %c0_4 = arith.constant 0 : index
    %c0_5 = arith.constant 0 : index
    %6 = vector.load %arg2[%c0_4, %c0_5] : memref<4x1xf32, #tpu.memory_space<vmem>>, vector<4x1xf32>
    %cst_6 = arith.constant dense<0.000000e+00> : vector<4x1xf32>
    %7 = tpu.matmul %5, %6, %cst_6 {dimension_numbers = #tpu.dot_dimension_numbers<[1], [0], [0], [1], [0, 0, 1, 1], [], []>} : vector<4x4xf32>, vector<4x1xf32>, vector<4x1xf32> -> vector<4x1xf32>
    %cst_7 = arith.constant 0.000000e+00 : f32
    %8 = vector.broadcast %cst_7 : f32 to vector<4x1xf32>
    %9 = arith.maximumf %7, %8 : vector<4x1xf32>
    %c0_8 = arith.constant 0 : index
    %c0_9 = arith.constant 0 : index
    %10 = vector.load %arg3[%c0_8, %c0_9] : memref<1x4xf32, #tpu.memory_space<vmem>>, vector<1x4xf32>
    %cst_10 = arith.constant dense<0.000000e+00> : vector<4x4xf32>
    %11 = tpu.matmul %9, %10, %cst_10 {dimension_numbers = #tpu.dot_dimension_numbers<[1], [0], [0], [1], [0, 0, 1, 1], [], []>} : vector<4x1xf32>, vector<1x4xf32>, vector<4x4xf32> -> vector<4x4xf32>
    %12 = vector.extract_strided_slice %11 {offsets = [0, 0], sizes = [2, 4], strides = [1, 1]} : vector<4x4xf32> to vector<2x4xf32>
    %13 = vector.extract_strided_slice %11 {offsets = [2, 0], sizes = [2, 4], strides = [1, 1]} : vector<4x4xf32> to vector<2x4xf32>
    %14 = arith.addf %12, %13 : vector<2x4xf32>
    %15 = arith.negf %14 : vector<2x4xf32>
    %16 = math.exp %15 : vector<2x4xf32>
    %cst_11 = arith.constant 1.000000e+00 : f32
    %17 = vector.broadcast %cst_11 : f32 to vector<2x4xf32>
    %18 = arith.addf %17, %16 : vector<2x4xf32>
    %19 = arith.divf %17, %18 : vector<2x4xf32>
    %20 = vector.shape_cast %19 : vector<2x4xf32> to vector<2x4x1xf32>
    %21 = vector.broadcast %20 : vector<2x4x1xf32> to vector<2x4x256xf32>
    %22 = arith.mulf %0, %21 : vector<2x4x256xf32>
    %c0_12 = arith.constant 0 : index
    %c0_13 = arith.constant 0 : index
    %c0_14 = arith.constant 0 : index
    %23 = vector.load %arg4[%c0_12, %c0_13, %c0_14] : memref<2x4x256xf32, #tpu.memory_space<vmem>>, vector<2x4x256xf32>
    tpu.vector_store %arg4[%c0_12, %c0_13, %c0_14], %22 {strides = array<i32>} : memref<2x4x256xf32, #tpu.memory_space<vmem>>, vector<2x4x256xf32>,
    return
  }
  func.func @transform_0(%arg0: i32) -> (i32, i32, i32) {
    %c0_i32 = arith.constant 0 : i32
    %c0_i32_0 = arith.constant 0 : i32
    %c0_i32_1 = arith.constant 0 : i32
    return %arg0, %c0_i32, %c0_i32_0 : i32, i32, i32
  }
  func.func @transform_1(%arg0: i32) -> (i32, i32) {
    %c0_i32 = arith.constant 0 : i32
    %c0_i32_0 = arith.constant 0 : i32
    %c0_i32_1 = arith.constant 0 : i32
    return %c0_i32, %c0_i32_0 : i32, i32
  }
  func.func @transform_2(%arg0: i32) -> (i32, i32) {
    %c0_i32 = arith.constant 0 : i32
    %c0_i32_0 = arith.constant 0 : i32
    %c0_i32_1 = arith.constant 0 : i32
    return %c0_i32, %c0_i32_0 : i32, i32
  }
  func.func @transform_3(%arg0: i32) -> (i32, i32, i32) {
    %c0_i32 = arith.constant 0 : i32
    %c0_i32_0 = arith.constant 0 : i32
    %c0_i32_1 = arith.constant 0 : i32
    return %arg0, %c0_i32, %c0_i32_0 : i32, i32, i32
  }
}

</mosaic_0001>

<bundles_post_ra>
// kernel: tpu_custom_call.1
= control target key start
LH: loop header
LB: loop body
LE: loop exit
PB: predicated region body
PF: predicated region fallthrough
CT: control target
= control target key end

     0   :  { %8 = vsyncpa [#allocation3], 0  ;;  %s358_s0 = inlined_call_operand.hbm [shape: f32[2,4,256], index: 0, kind: input, shape index: {}]   ;;  %s359_s1 = inlined_call_operand.vmem [shape: f32[4,1], index: 1, kind: input, shape index: {}]   ;;  %s360_s2 = inlined_call_operand.vmem [shape: f32[1,4], index: 2, kind: input, shape index: {}]   ;;  %s361_s3 = inlined_call_operand.hbm [shape: f32[2,4,256], index: 3, kind: output, shape index: {}]  }
   0x1   :  { %9 = vsyncpa [#allocation4], 0  ;;  %s14_s14 = sshll.u32 %s358_s0, 4  ;;  %s296_s15 = smov [#allocation2]   ;;  %s15_s14 = int_to_ptr.hbm [resolvable:$true] %s14_s14 }
   0x2   :  { %s16_s16 = sshll.u32 %s296_s15, 4  ;;  %s297_s17 = smov 128   ;;  %s17_s16 = int_to_ptr.vmem [resolvable:$true] %s16_s16 }
   0x3   :  { %s298_s18 = smov 8  }
   0x4   :  { %22 = dma.hbm_to_vmem [thread:$0]  %s15_s14, 256, %s17_s16, [#allocation3], %s297_s17, %s297_s17, %s298_s18  }
   0x5   :  { %292 = dma.done.wait [#allocation3], 256  }
   0x6   :  { %293 = vsyncadd [#allocation3], 4294967040  ;;  %v327_v0 = vld [vmem:[#allocation2] sm:$0xff]  ;;  %v329_v1 = vld [vmem:[#allocation2 + $0x8] sm:$0xff]  ;;  %vm46_vm0 = vcmask 1043456   ;;  %v82_v26 = vlaneseq  ;;  %vm86_vm1 = vcmask 1041409  }
   0x7   :  { %35 = vst [vmem:[#allocation1] ss:$2 sm:$0xff] %v327_v0  ;;  %v98_v22 = vld [vmem:[%s359_s1] sm:$0xf]  ;;  %vm93_vm2 = vcmask 1043459   ;;  %vm96_vm3 = vcmask 1041408  }
   0x8   :  { %39 = vst [vmem:[#allocation1 + $0x10] ss:$2 sm:$0xff] %v329_v1  ;;  %228 = vmatpush.msk.msra.mxu0 %vm46_vm0, %v98_v22  ;;  %v83_v28 = vand.u32 127, %v82_v26  ;;  %vm99_vm4 = vcmask 31744   ;;  %v127_v38 = vld [vmem:[%s360_s2] sm:$0x1] }
   0x9   :  { %vm132_vm5 = vcmask 1040384   ;;  %vm128_vm6 = vcmask 7168   ;;  %v181_v41 = vshrl.u32 %v82_v26, 7  ;;  %v299_v60 = vmov 839922192   ;;  %s300_s2 = smov [#allocation5]  }
   0xa   :  { %230 = vmatpush.msk.msra.mxu1 %vm132_vm5, %v127_v38  ;;  %v196_v61 = vunpack.c.l.s4 %v299_v60  ;;  %s213_s21 = sshll.u32 %s300_s2, 4  ;;  %s215_s24 = sshll.u32 %s361_s3, 4  ;;  %s214_s21 = int_to_ptr.vmem [resolvable:$true] %s213_s21  ;;  %s216_s24 = int_to_ptr.hbm [resolvable:$true] %s215_s24 }
   0xb   :  { %238 = vset.pattern.permute.xlu2 %v181_v41  ;;  %239 = vset.pattern.permute.xlu0 %v181_v41 }
   0xc   :  { %v197_v62 = vunpack.c.0.s8 %v196_v61 }
   0xe   :  { %v36_v2 = vld.sshfl [vmem:[#allocation1] sm:$0xff pattern:$0x75316420]  ;;  %v37_v3 = vld.sshfl [vmem:[#allocation1 + $0x8] sm:$0xff pattern:$0x75316420] }
   0xf   :  { %v47_v4 = vsel %vm46_vm0, %v36_v2, 0.0  ;;  %v48_v5 = vsel %vm46_vm0, %v37_v3, 0.0  ;;  %57 = vst [vmem:[#allocation1] ss:$2 sm:$0xff] %v327_v0 }
  0x10   :  { %v49_v6 = vadd.f32 %v48_v5, %v47_v4  ;;  %v40_v7 = vld.sshfl [vmem:[#allocation1 + $0x10] sm:$0xff pattern:$0x75316420]  ;;  %v41_v8 = vld.sshfl [vmem:[#allocation1 + $0x18] sm:$0xff pattern:$0x75316420] }
  0x11   :  { %61 = vst [vmem:[#allocation1 + $0x10] ss:$2 sm:$0xff] %v329_v1  ;;  %v52_v9 = vsel %vm46_vm0, %v40_v7, 0.0  ;;  %v53_v10 = vsel %vm46_vm0, %v41_v8, 0.0 }
  0x12   :  { %50 = vadd.xlane.f32.xlu0 %v49_v6  ;;  %v54_v13 = vadd.f32 %v53_v10, %v52_v9 }
  0x16   :  { %v58_v11 = vld.sshfl [vmem:[#allocation1] sm:$0xff pattern:$0x75316420]  ;;  %v59_v12 = vld.sshfl [vmem:[#allocation1 + $0x8] sm:$0xff pattern:$0x75316420] }
  0x17   :  { %v68_v14 = vsel %vm46_vm0, %v58_v11, -inf  ;;  %v69_v15 = vsel %vm46_vm0, %v59_v12, -inf }
  0x18   :  { %v70_v16 = vmax.f32 %v68_v14, %v69_v15  ;;  %v62_v17 = vld.sshfl [vmem:[#allocation1 + $0x10] sm:$0xff pattern:$0x75316420]  ;;  %v63_v18 = vld.sshfl [vmem:[#allocation1 + $0x18] sm:$0xff pattern:$0x75316420] }
  0x19   :  { %v73_v19 = vsel %vm46_vm0, %v62_v17, -inf  ;;  %v74_v20 = vsel %vm46_vm0, %v63_v18, -inf }
  0x1a   :  { %71 = vmax.xlane.f32.xlu1 %v70_v16  ;;  %55 = vadd.xlane.f32.xlu0 %v54_v13  ;;  %v75_v21 = vmax.f32 %v73_v19, %v74_v20 }
  0x22   :  { %76 = vmax.xlane.f32.xlu1 %v75_v21 }
  0x85   :  { %v51_v23 = vpop.xlane.xlu0 %50 }
  0x86   :  { %v78_v29 = vmul.f32 0.00390625, %v51_v23 }
  0x88   :  { %v84_v32 = vperm.slane %v78_v29, %v83_v28 }
  0x8d   :  { %v72_v24 = vpop.xlane.xlu1 %71  ;;  %v56_v25 = vpop.xlane.xlu0 %55 }
  0x8e   :  { %v79_v27 = vmul.f32 0.00390625, %v56_v25  ;;  %v91_v33 = vperm.slane %v72_v24, %v83_v28 }
  0x90   :  { %v85_v30 = vperm.slane %v79_v27, %v83_v28 }
  0x92   :  { %v87_v35 = vsel %vm86_vm1, %v85_v30, %v84_v32 }
  0x95   :  { %v77_v31 = vpop.xlane.xlu1 %76 }
  0x96   :  { %v92_v34 = vperm.slane %v77_v31, %v83_v28 }
  0x98   :  { %v94_v36 = vsel %vm93_vm2, %v92_v34, %v91_v33 }
  0x99   :  { %v97_v37 = vsel %vm96_vm3, %v87_v35, %v94_v36 }
  0x9a   :  { %229 = vmatmul.msk.f32.vlgmr.msra.gmra.mxu0 %vm99_vm4, %v97_v37 }
 0x117   :  { %v123_v39 = vpop.f32.mrf.mxu0 }
 0x118   :  { %v126_v40 = vmax.f32 %v123_v39, 0.0 }
 0x11a   :  { %231 = vmatmul.msk.f32.vlgmr.msra.gmra.mxu1 %vm128_vm6, %v126_v40 }
 0x197   :  { %v153_v42 = vpop.f32.mrf.mxu1 }
 0x198   :  { %v157_v43 = vrot.slane %v153_v42, 2 }
 0x19a   :  { %v159_v44 = vadd.f32 %v157_v43, %v153_v42 }
 0x19c   :  { %v232_v45 = vmul.f32 -1.442695, %v159_v44 }
 0x19e   :  { %240 = vpow2.f32 %v232_v45 }
 0x1a4   :  { %v241_v46 = vpop.eup %240 }
 0x1a5   :  { %v163_v47 = vadd.f32 1.0, %v241_v46 }
 0x1a7   :  { %242 = vrcp.f32 %v163_v47  ;;  %v175_v51 = vand.u32 2147483648, %v163_v47  ;;  %v173_v53 = vand.u32 2147483647, %v163_v47  ;;  %vm169_vm8 = vweird.f32 %v163_v47 }
 0x1a9   :  { %v176_v55 = vor.u32 1.1754944e-38, %v175_v51  ;;  %vm174_vm10 = vcmp.eq.f32.partialorder %v173_v53, 8.507059e+37 }
 0x1ad   :  { %v243_v48 = vpop.eup %242 }
 0x1ae   :  { %v165_v49 = vmul.f32 %v243_v48, %v163_v47  ;;  %vm170_vm7 = vweird.f32 %v243_v48 }
 0x1af   :  { %vm171_vm9 = vmor %vm169_vm8, %vm170_vm7 }
 0x1b0   :  { %v166_v50 = vsub.f32 1.0, %v165_v49 }
 0x1b2   :  { %v167_v52 = vmul.f32 %v243_v48, %v166_v50 }
 0x1b4   :  { %v168_v54 = vadd.f32 %v243_v48, %v167_v52 }
 0x1b6   :  { %v172_v56 = vsel %vm171_vm9, %v243_v48, %v168_v54 }
 0x1b7   :  { %v177_v57 = vsel %vm174_vm10, %v176_v55, %v172_v56 }
 0x1b8   :  { %v179_v58 = vperm.slane %v177_v57, 0  ;;  %v186_v59 = vperm.slane %v177_v57, 1 }
 0x1ba   :  { %184 = vperm.xlu2 %238, %v179_v58  }
 0x1c2   :  { %191 = vperm.xlu2 %238, %v186_v59  }
 0x214   :  { %v185_v63 = vpop.permute.xlu2 %184 }
 0x215   :  { %v198_v2 = vperm.slane %v185_v63, %v197_v62 }
 0x217   :  { %v205_v3 = vmul.f32 %v198_v2, %v327_v0 }
 0x219   :  { %207 = vst [vmem:[#allocation5] sm:$0xff] %v205_v3 }
 0x21c   :  { %v192_v4 = vpop.permute.xlu2 %191 }
 0x21d   :  { %v202_v5 = vperm.slane %v192_v4, %v197_v62 }
 0x21f   :  { %v206_v6 = vmul.f32 %v202_v5, %v329_v1 }
 0x221   :  { %208 = vst [vmem:[#allocation5 + $0x8] sm:$0xff] %v206_v6 }
 0x222   :  { %221 = dma.vmem_to_hbm [thread:$0]  %s214_s21, 256, %s216_s24, [#allocation4], %s297_s17, %s297_s17, %s298_s18  }
 0x223   :  { %294 = dma.done.wait [#allocation4], 256  }
 0x224   :  { %295 = vsyncadd [#allocation4], 4294967040 }
 0x225   :  { %226 = vsyncpa [#allocation3], 1 }
 0x226   :  { %227 = vsyncpa [#allocation4], 1 }

</bundles_post_ra>
